<compile_context>
chip_gen: v7x
topology: tpu7x:2x2x1
jax: 0.10.0
libtpu: 0.0.40
codegen_flags: <defaults>
</compile_context>

<pallas_src>
import numpy as np
import jax
import jax.numpy as jnp
from jax import lax
from jax.experimental import pallas as pl
from jax.experimental.pallas import tpu as pltpu


def _make_adapter_kernel(n_icv, unroll_small_n):
    def kernel(x_ref, icvs_ref, icv_sumsq_ref, icv_scaled_ref, o_ref):
        x_in = x_ref[...]                       # native dtype (bf16 stays bf16 for the MXU)
        x = x_in.astype(jnp.float32)            # f32 for the norm / scale chain

        sumsq = jnp.sum(x * x, axis=-1, keepdims=True)              # (TM, 1)
        x_norm = jnp.sqrt(sumsq)                                     # ||x||
        inv_x12 = lax.rsqrt(jnp.maximum(sumsq, 1e-24))               # F.normalize eps=1e-12

        # cosine similarity against all ICVs: (TM,H) x (N,H)^T -> (TM,N), f32 acc.
        dots = lax.dot_general(x_in, icvs_ref[...], (((1,), (1,)), ((), ())),
                               preferred_element_type=jnp.float32)
        # torch F.cosine_similarity eps: dots / sqrt(clamp(||x||^2*||icv||^2, eps^2))
        inv_den = lax.rsqrt(jnp.maximum(sumsq * icv_sumsq_ref[...], 1e-16))
        lam = 1.0 + jnp.maximum(dots * inv_den, 0.0)                 # (TM, N)

        # icv_scaled_i = -(0.1/N) * alpha_i * normalize(icv_i); combine with lam.
        if unroll_small_n:
            # K=N contraction as VPU broadcast-FMAs (kernel is HBM-bound, VPU has slack).
            icv_all = lam[:, 0:1] * icv_scaled_ref[0:1, :]
            for i in range(1, n_icv):
                icv_all = icv_all + lam[:, i:i + 1] * icv_scaled_ref[i:i + 1, :]
        else:
            icv_all = lax.dot_general(lam, icv_scaled_ref[...],
                                      (((1,), (0,)), ((), ())),
                                      preferred_element_type=jnp.float32)

        y = x * inv_x12 + icv_all
        y_sumsq = jnp.sum(y * y, axis=-1, keepdims=True)
        inv_y12 = lax.rsqrt(jnp.maximum(y_sumsq, 1e-24))
        o_ref[...] = (y * (inv_y12 * x_norm)).astype(o_ref.dtype)

    return kernel


def _round_up(x, m):
    return ((x + m - 1) // m) * m


def _chip_info():
    """(physical VMEM bytes, has-2-TensorCores?) with safe fallbacks."""
    try:
        vmem = int(pltpu.get_tpu_info().vmem_capacity_bytes)
    except Exception:
        vmem = 64 * 1024 * 1024                 # conservative: v7x per-TC VMEM
    try:
        kind = jax.devices()[0].device_kind.lower()
    except Exception:
        kind = ""
    two_tc = ("v7" in kind) or ("7x" in kind)
    return vmem, two_tc


def _pick_tiling(rows, h, in_itemsize, vmem_bytes, two_tc, tm_override=None):
    """Pick (row tile, grid steps, scoped VMEM limit)."""
    vmem_limit = min(int(vmem_bytes * 0.7), 100 * 1024 * 1024)

    if tm_override is not None:                 # testing hook (must be mult. of 8 or >= rows)
        tm = min(int(tm_override), rows)
        return tm, int(pl.cdiv(rows, tm)), vmem_limit

    # Per-row footprint: double-buffered input + output tiles (input dtype) plus
    # ~6 f32 (TM,H) temporaries Mosaic materializes (x, x*x, icv_all, y, y*y, cast-out).
    bytes_per_row = 4 * h * in_itemsize + 6 * h * 4
    tm = max(8, (int(vmem_limit * 0.5) // max(bytes_per_row, 1)) // 8 * 8)

    # Enough grid steps for DMA/compute overlap; v7x also needs work for 2 TCs.
    min_steps = 4 if two_tc else 2
    tm_steps_cap = max(8, _round_up(int(pl.cdiv(rows, min_steps)), 8))
    tm = min(tm, tm_steps_cap)

    if tm >= rows:
        return rows, 1, vmem_limit              # single full block (no 8-div constraint)

    grid = int(pl.cdiv(rows, tm))
    if two_tc and grid < 16 and grid % 2 == 1:
        # Short odd grids leave one TensorCore with an extra tile; rebalance.
        tm = max(8, _round_up(int(pl.cdiv(rows, grid + 1)), 8))
        grid = int(pl.cdiv(rows, tm))
    return tm, grid, vmem_limit


def adapter_forward(x, icvs, alpha, *, tm_override=None):
    """Pallas port of AdapterLayer.forward. x: (B,S,H); icvs: (N,H); alpha: (N,)."""
    if icvs is None:
        return x

    B, S, H = x.shape
    n = int(icvs.shape[0])
    rows = B * S
    in_itemsize = jnp.dtype(x.dtype).itemsize

    # ---- per-ICV preprocessing, hoisted out of the sequential grid loop ----
    icvs_f = jnp.asarray(icvs, dtype=jnp.float32)                        # (N, H)
    alpha_f = jnp.asarray(alpha, dtype=jnp.float32).reshape(n, 1)        # (N, 1)
    icv_sumsq = jnp.sum(icvs_f * icvs_f, axis=-1).reshape(1, n)          # ||icv||^2
    icv_norm = jnp.sqrt(icv_sumsq).reshape(n, 1)
    icv_unit = icvs_f / jnp.maximum(icv_norm, 1e-12)                     # F.normalize eps
    icv_scaled = (-(0.1 / n)) * alpha_f * icv_unit                       # (N, H)
    # cos dot runs in the input dtype (bf16 is MXU-native); accumulation stays f32.
    icvs_dot = icvs_f if x.dtype == jnp.float32 else icvs_f.astype(x.dtype)

    x2 = x.reshape(rows, H)                                              # free view

    # Lane-pad H to a multiple of 128 only when needed (keeps stores lane-dense;
    # zero columns don't change norms, dots, or the normalize chain).
    Hp = _round_up(H, 128)
    if Hp != H:
        pad = ((0, 0), (0, Hp - H))
        x2 = jnp.pad(x2, pad)
        icvs_dot = jnp.pad(icvs_dot, pad)
        icv_scaled = jnp.pad(icv_scaled, pad)

    vmem_cap, two_tc = _chip_info()
    tm, grid, vmem_limit = _pick_tiling(rows, Hp, in_itemsize, vmem_cap, two_tc,
                                        tm_override)

    cost = pl.CostEstimate(
        flops=int(rows) * (4 * Hp * n + 8 * Hp),
        transcendentals=3 * int(rows),
        bytes_accessed=2 * int(rows) * Hp * in_itemsize + 3 * n * Hp * 4,
    )

    kernel = _make_adapter_kernel(n, unroll_small_n=(n <= 8))

    out = pl.pallas_call(
        kernel,
        out_shape=jax.ShapeDtypeStruct((rows, Hp), x.dtype),
        grid_spec=pltpu.PrefetchScalarGridSpec(
            num_scalar_prefetch=0,
            grid=(grid,),                                   # ragged last tile handled by Pallas
            in_specs=[
                pl.BlockSpec((tm, Hp), lambda i: (i, 0)),   # x row tile
                pl.BlockSpec((n, Hp), lambda i: (0, 0)),    # icvs (dot dtype), VMEM-resident
                pl.BlockSpec((1, n), lambda i: (0, 0)),     # ||icv||^2 per ICV
                pl.BlockSpec((n, Hp), lambda i: (0, 0)),    # -(0.1/N)*alpha*normalize(icv)
            ],
            out_specs=pl.BlockSpec((tm, Hp), lambda i: (i, 0)),
        ),
        compiler_params=pltpu.CompilerParams(
            dimension_semantics=("parallel",),
            vmem_limit_bytes=vmem_limit),
        cost_estimate=cost,
    )(x2, icvs_dot, icv_sumsq, icv_scaled)

    if Hp != H:
        out = out[:, :H]
    return out.reshape(B, S, H)


def adapter_reference(x, icvs, alpha):
    """Plain-JAX reimplementation of the torch forward (torch cosine eps semantics)."""
    xf = x.astype(jnp.float32)
    sumsq = jnp.sum(xf * xf, axis=-1, keepdims=True)
    norm = jnp.sqrt(sumsq)
    n = icvs.shape[0]
    icv_all = jnp.zeros_like(xf)
    for i in range(n):
        icv = icvs[i].astype(jnp.float32)
        icv_sumsq = jnp.sum(icv * icv)
        # F.cosine_similarity: dots / sqrt(clamp(||x||^2 * ||icv||^2, eps^2)), eps=1e-8
        cos = jnp.sum(xf * icv, axis=-1, keepdims=True) / jnp.sqrt(
            jnp.maximum(sumsq * icv_sumsq, 1e-16))
        lam = 1.0 + jnp.maximum(0.0, cos)
        icv_all = icv_all - alpha[i] * lam * (
            icv / jnp.maximum(jnp.sqrt(icv_sumsq), 1e-12))
    icv_all = 0.1 * icv_all / n
    xu = xf / jnp.maximum(norm, 1e-12)
    y = xu + icv_all
    y = y / jnp.maximum(jnp.linalg.norm(y, axis=-1, keepdims=True), 1e-12) * norm
    return y.astype(x.dtype)


if __name__ == "__main__":
    key = jax.random.PRNGKey(0)
    kx, kicv, kx2 = jax.random.split(key, 3)

    # Small canonical test: B=2, S=8, H=128, 3 ICVs.
    B, S, H, N_ICV = 2, 8, 128, 3
    x = jax.random.normal(kx, (B, S, H), dtype=jnp.float32)
    icvs = jax.random.normal(kicv, (N_ICV, H), dtype=jnp.float32)
    alpha = jnp.array([0.1, 0.2, 0.3], dtype=jnp.float32)

    out = jax.block_until_ready(adapter_forward(x, icvs, alpha))
    ref = adapter_reference(x, icvs, alpha)
    np.testing.assert_allclose(np.asarray(out), np.asarray(ref),
                               rtol=1e-4, atol=1e-4)

    # Ragged-grid path: rows (=21) not a multiple of the row tile (tm=8) —
    # exercises Pallas boundary-block read-pad / write-mask instead of zero-pad.
    x_r = jax.random.normal(kx2, (3, 7, 128), dtype=jnp.float32)
    out_r = jax.block_until_ready(adapter_forward(x_r, icvs, alpha, tm_override=8))
    ref_r = adapter_reference(x_r, icvs, alpha)
    np.testing.assert_allclose(np.asarray(out_r), np.asarray(ref_r),
                               rtol=1e-4, atol=1e-4)

    print("KERNEL_OK")
</pallas_src>

<mosaic_0001>
module attributes {stable_mosaic.version = 11 : i64} {
  func.func @kernel(%arg0: i32, %arg1: memref<8x128xf32, #tpu.memory_space<vmem>>, %arg2: memref<3x128xf32, #tpu.memory_space<vmem>>, %arg3: memref<1x3xf32, #tpu.memory_space<vmem>>, %arg4: memref<3x128xf32, #tpu.memory_space<vmem>>, %arg5: memref<8x128xf32, #tpu.memory_space<vmem>>) attributes {dimension_semantics = [#tpu.dimension_semantics<parallel>], iteration_bounds = array<i64: 2>, scalar_prefetch = 0 : i64, scratch_operands = 0 : i64, tpu.core_type = #tpu.core_type<tc>, window_params = [{transform_indices = @transform_0, window_bounds = array<i64: 8, 128>}, {pipeline_mode = #tpu.pipeline_mode<synchronous>, transform_indices = @transform_1, window_bounds = array<i64: 3, 128>}, {pipeline_mode = #tpu.pipeline_mode<synchronous>, transform_indices = @transform_2, window_bounds = array<i64: 1, 3>}, {pipeline_mode = #tpu.pipeline_mode<synchronous>, transform_indices = @transform_3, window_bounds = array<i64: 3, 128>}, {transform_indices = @transform_4, window_bounds = array<i64: 8, 128>}]} {
    %c0 = arith.constant 0 : index
    %c0_0 = arith.constant 0 : index
    %0 = vector.load %arg1[%c0, %c0_0] : memref<8x128xf32, #tpu.memory_space<vmem>>, vector<8x128xf32>
    %1 = arith.mulf %0, %0 : vector<8x128xf32>
    %cst = arith.constant dense<0.000000e+00> : vector<8xf32>
    %2 = vector.multi_reduction <add>, %1, %cst [1] : vector<8x128xf32> to vector<8xf32>
    %3 = vector.shape_cast %2 : vector<8xf32> to vector<8x1xf32>
    %4 = math.sqrt %3 : vector<8x1xf32>
    %cst_1 = arith.constant 1.000000e-24 : f32
    %5 = vector.broadcast %cst_1 : f32 to vector<8x1xf32>
    %6 = arith.maximumf %3, %5 : vector<8x1xf32>
    %7 = math.rsqrt %6 : vector<8x1xf32>
    %c0_2 = arith.constant 0 : index
    %c0_3 = arith.constant 0 : index
    %8 = vector.load %arg2[%c0_2, %c0_3] : memref<3x128xf32, #tpu.memory_space<vmem>>, vector<3x128xf32>
    %cst_4 = arith.constant dense<0.000000e+00> : vector<8x3xf32>
    %9 = tpu.matmul %0, %8, %cst_4 {dimension_numbers = #tpu.dot_dimension_numbers<[1], [1], [0], [0], [0, 0, 1, 0], [], []>} : vector<8x128xf32>, vector<3x128xf32>, vector<8x3xf32> -> vector<8x3xf32>
    %c0_5 = arith.constant 0 : index
    %c0_6 = arith.constant 0 : index
    %10 = vector.load %arg3[%c0_5, %c0_6] : memref<1x3xf32, #tpu.memory_space<vmem>>, vector<1x3xf32>
    %11 = vector.broadcast %3 : vector<8x1xf32> to vector<8x3xf32>
    %12 = vector.broadcast %10 : vector<1x3xf32> to vector<8x3xf32>
    %13 = arith.mulf %11, %12 : vector<8x3xf32>
    %cst_7 = arith.constant 1.000000e-16 : f32
    %14 = vector.broadcast %cst_7 : f32 to vector<8x3xf32>
    %15 = arith.maximumf %13, %14 : vector<8x3xf32>
    %16 = math.rsqrt %15 : vector<8x3xf32>
    %17 = arith.mulf %9, %16 : vector<8x3xf32>
    %cst_8 = arith.constant 0.000000e+00 : f32
    %18 = vector.broadcast %cst_8 : f32 to vector<8x3xf32>
    %19 = arith.maximumf %17, %18 : vector<8x3xf32>
    %cst_9 = arith.constant 1.000000e+00 : f32
    %20 = vector.broadcast %cst_9 : f32 to vector<8x3xf32>
    %21 = arith.addf %20, %19 : vector<8x3xf32>
    %22 = vector.extract_strided_slice %21 {offsets = [0, 0], sizes = [8, 1], strides = [1, 1]} : vector<8x3xf32> to vector<8x1xf32>
    %c0_10 = arith.constant 0 : index
    %c0_11 = arith.constant 0 : index
    %23 = vector.load %arg4[%c0_10, %c0_11] : memref<3x128xf32, #tpu.memory_space<vmem>>, vector<1x128xf32>
    %24 = vector.broadcast %22 : vector<8x1xf32> to vector<8x128xf32>
    %25 = vector.broadcast %23 : vector<1x128xf32> to vector<8x128xf32>
    %26 = arith.mulf %24, %25 : vector<8x128xf32>
    %27 = vector.extract_strided_slice %21 {offsets = [0, 1], sizes = [8, 1], strides = [1, 1]} : vector<8x3xf32> to vector<8x1xf32>
    %c1 = arith.constant 1 : index
    %c0_12 = arith.constant 0 : index
    %28 = vector.load %arg4[%c1, %c0_12] : memref<3x128xf32, #tpu.memory_space<vmem>>, vector<1x128xf32>
    %29 = vector.broadcast %27 : vector<8x1xf32> to vector<8x128xf32>
    %30 = vector.broadcast %28 : vector<1x128xf32> to vector<8x128xf32>
    %31 = arith.mulf %29, %30 : vector<8x128xf32>
    %32 = arith.addf %26, %31 : vector<8x128xf32>
    %33 = vector.extract_strided_slice %21 {offsets = [0, 2], sizes = [8, 1], strides = [1, 1]} : vector<8x3xf32> to vector<8x1xf32>
    %c2 = arith.constant 2 : index
    %c0_13 = arith.constant 0 : index
    %34 = vector.load %arg4[%c2, %c0_13] : memref<3x128xf32, #tpu.memory_space<vmem>>, vector<1x128xf32>
    %35 = vector.broadcast %33 : vector<8x1xf32> to vector<8x128xf32>
    %36 = vector.broadcast %34 : vector<1x128xf32> to vector<8x128xf32>
    %37 = arith.mulf %35, %36 : vector<8x128xf32>
    %38 = arith.addf %32, %37 : vector<8x128xf32>
    %39 = vector.broadcast %7 : vector<8x1xf32> to vector<8x128xf32>
    %40 = arith.mulf %0, %39 : vector<8x128xf32>
    %41 = arith.addf %40, %38 : vector<8x128xf32>
    %42 = arith.mulf %41, %41 : vector<8x128xf32>
    %cst_14 = arith.constant dense<0.000000e+00> : vector<8xf32>
    %43 = vector.multi_reduction <add>, %42, %cst_14 [1] : vector<8x128xf32> to vector<8xf32>
    %44 = vector.shape_cast %43 : vector<8xf32> to vector<8x1xf32>
    %cst_15 = arith.constant 1.000000e-24 : f32
    %45 = vector.broadcast %cst_15 : f32 to vector<8x1xf32>
    %46 = arith.maximumf %44, %45 : vector<8x1xf32>
    %47 = math.rsqrt %46 : vector<8x1xf32>
    %48 = arith.mulf %47, %4 : vector<8x1xf32>
    %49 = vector.broadcast %48 : vector<8x1xf32> to vector<8x128xf32>
    %50 = arith.mulf %41, %49 : vector<8x128xf32>
    %c0_16 = arith.constant 0 : index
    %c0_17 = arith.constant 0 : index
    %51 = vector.load %arg5[%c0_16, %c0_17] : memref<8x128xf32, #tpu.memory_space<vmem>>, vector<8x128xf32>
    tpu.vector_store %arg5[%c0_16, %c0_17], %50 {strides = array<i32>} : memref<8x128xf32, #tpu.memory_space<vmem>>, vector<8x128xf32>,
    return
  }
  func.func @transform_0(%arg0: i32) -> (i32, i32) {
    %c0_i32 = arith.constant 0 : i32
    %c0_i32_0 = arith.constant 0 : i32
    return %arg0, %c0_i32 : i32, i32
  }
  func.func @transform_1(%arg0: i32) -> (i32, i32) {
    %c0_i32 = arith.constant 0 : i32
    %c0_i32_0 = arith.constant 0 : i32
    %c0_i32_1 = arith.constant 0 : i32
    return %c0_i32, %c0_i32_0 : i32, i32
  }
  func.func @transform_2(%arg0: i32) -> (i32, i32) {
    %c0_i32 = arith.constant 0 : i32
    %c0_i32_0 = arith.constant 0 : i32
    %c0_i32_1 = arith.constant 0 : i32
    return %c0_i32, %c0_i32_0 : i32, i32
  }
  func.func @transform_3(%arg0: i32) -> (i32, i32) {
    %c0_i32 = arith.constant 0 : i32
    %c0_i32_0 = arith.constant 0 : i32
    %c0_i32_1 = arith.constant 0 : i32
    return %c0_i32, %c0_i32_0 : i32, i32
  }
  func.func @transform_4(%arg0: i32) -> (i32, i32) {
    %c0_i32 = arith.constant 0 : i32
    %c0_i32_0 = arith.constant 0 : i32
    return %arg0, %c0_i32 : i32, i32
  }
}

</mosaic_0001>

<bundles_post_ra>
// kernel: tpu_custom_call.1
= control target key start
LH: loop header
LB: loop body
LE: loop exit
PB: predicated region body
PF: predicated region fallthrough
CT: control target
= control target key end

     0   :  { %9 = vsyncpa [#allocation3], 0  ;;  %s939_s0 = inlined_call_operand.hbm [shape: f32[16,128], index: 0, kind: input, shape index: {}]   ;;  %s940_s1 = inlined_call_operand.hbm [shape: f32[3,128], index: 1, kind: input, shape index: {}]   ;;  %s941_s2 = inlined_call_operand.vmem [shape: f32[1,3], index: 2, kind: input, shape index: {}]   ;;  %s942_s3 = inlined_call_operand.vmem [shape: f32[3,128], index: 3, kind: input, shape index: {}]   ;;  %s943_s4 = inlined_call_operand.hbm [shape: f32[16,128], index: 4, kind: output, shape index: {}]  }
   0x1   :  { %11 = vsyncpa [#allocation3 + $0x1], 0 }
   0x2   :  { %12 = vsyncpa [#allocation6], 0 }
   0x3   :  { %13 = vsyncpa [#allocation4], 0 }
   0x4   :  { %15 = vsyncpa [#allocation4 + $0x1], 0  ;;  %s722_s15 = smov 0   ;;  %s724_s16 = smov 0  }
   0x5   :  { %s726_s17 = smov 0   ;;  %s728_s18 = smov 0  }
   0x6 LB: > { %s743_s19 = sadd.s32 4294967295, %s687_s18   ;;  %s460_s20 = sadd.s32 4294967294, %s687_s18   ;;  %s687_s18 = sphi %s728_s18, %s967_s18   ;;  %s683_s17 = sphi %s726_s17, %s966_s17   ;;  %s679_s16 = sphi %s724_s16, %s965_s16   ;;  %s675_s15 = sphi %s722_s15, %s964_s15  }
   0x7   : > { %p41_p0 = scmp.ne.s32.totalorder %s679_s16, %s675_s15  ;;  %p944_p1 = scmp.eq.s32.totalorder %s743_s19, 0 }
   0x8   : > { %p134_p3 = scmp.eq.s32.totalorder %s460_s20, 1  ;;  %p461_p5 = scmp.ge.s32.totalorder %s687_s18, 1 }
   0x9   : > { %p752_p4 = por %p944_p1, %p41_p0  ;;  %p141_p7 = scmp.lt.s32.totalorder %s687_s18, 3 }
   0xa   : > { %p757_p6 = por %p134_p3, %p41_p0  ;;  %s689_s24 = smov [#allocation5]  }
   0xb   : > { %s947_s21 = scalar_select %p752_p4, 1, 0 }
   0xc   : > { %s948_s22 = scalar_select %p757_p6, 1, 0 }
   0xd   : > { %p762_p8 = pnand %p461_p5, %p141_p7  ;;  %s154_s25 = sshll.u32 %s689_s24, 4  ;;  %s155_s25 = int_to_ptr.vmem [resolvable:$true] %s154_s25 }
   0xe   : > { %s770_s26 = sadd.s32 1, %s687_s18   ;;  %s28_s30 = sadd.s32 1, %s683_s17 }
   0xf   : > { %s949_s23 = scalar_select %p762_p8, 1, 0 }
  0x10   : > { %p493_p10 = pneg %p762_p8  ;;  %s25_s28 = ssub.s32 %s687_s18, %s770_s26 }
  0x11   : > { %p780_p12 = scmp.eq.s32.totalorder %s25_s28, 0  ;;  %s559_s7 = scalar_lea.hbm %s940_s1, 64 }
  0x12   : > { %p774_p11 = pnand %p493_p10, %p944_p1  ;;  %p560_p0 = scmp.ne.s32.totalorder %s940_s1, %s559_s7 }
  0x13   : > { %s951_s29 = scalar_select %p780_p12, 1, 0 }
  0x14   : > { %p561_p3 = pneg %p774_p11  ;;  %p566_p10 = scmp.lt.u32.totalorder %s559_s7, %s940_s1 }
  0x16   : > { %p562_p5 = pnand %p561_p3, %p560_p0 }
  0x18   : > { %p563_p7 = pneg %p562_p5 }
  0x1a   : > { %p568_p9 = pnand %p566_p10, %p563_p7 }
  0x1c   : > { %571 = shalt.err (!%p568_p9)
}
  0x1d   : > { %s572_s12 = scalar_lea.vmem %s155_s25, 64  ;;  %p580_p6 = scmp.lt.s32.totalorder %s155_s25, %s155_s25 }
  0x1e   : > { %p573_p1 = scmp.ne.s32.totalorder %s155_s25, %s572_s12  ;;  %p581_p4 = scmp.lt.s32.totalorder %s572_s12, %s572_s12 }
  0x20   : > { %p575_p2 = pnand %p573_p1, %p561_p3  ;;  %p582_p8 = por %p581_p4, %p580_p6 }
  0x22   : > { %p576_p13 = pneg %p575_p2 }
  0x24   : > { %p583_p12 = pnand %p582_p8, %p576_p13 }
  0x26   : > { %586 = shalt.err (!%p583_p12)
}
  0x27   : > { %496 = dma.hbm_to_vmem [thread:$0]  (!%p774_p11), %s940_s1, 64, %s155_s25, [#allocation6]  }
  0x28   : > { %p952_p1 = scmp.ne.s32.totalorder %s951_s29, 0  ;;  %p36_p2 = scmp.eq.s32.totalorder %s687_s18, 0 }
  0x29   : > { %p953_p4 = scmp.ne.s32.totalorder %s683_s17, %s679_s16  ;;  %p954_p6 = scmp.eq.s32.totalorder %s743_s19, 1 }
  0x2a   : > { %s806_s20 = scalar_select %p952_p1, %s683_s17, %s28_s30  }
  0x2b   : > { %p814_p8 = por %p954_p6, %p953_p4  ;;  %p506_p9 = scmp.lt.s32.totalorder %s687_s18, 2 }
  0x2c   : > { %s171_s27 = sand.u32 1, %s683_s17   ;;  %p956_p12 = pmov %p953_p4 }
  0x2d   : > { %s464_s28 = sshll.u32 %s171_s27, 3  ;;  %s465_s5 = sshll.u32 %s687_s18, 7 }
  0x2e   : > { %p37_p13 = por %p36_p2, %p956_p12  ;;  %s827_s25 = scalar_lea.hbm %s939_s0, %s465_s5 }
  0x2f   : > { %s175_s29 = scalar_lea.vmem [#allocation2], %s464_s28  ;;  %s172_s9 = scalar_lea.sflag [#allocation3], %s171_s27 }
  0x30   : > { %s182_s30 = sshll.u32 %s175_s29, 4  ;;  %p829_p11 = pnand %p506_p9, %p37_p13  ;;  %s833_s30 = int_to_ptr.vmem [resolvable:$true] %s182_s30 }
  0x31   : > { %s587_s10 = scalar_lea.hbm %s827_s25, 128  ;;  %s592_s13 = scalar_lea.hbm %s939_s0, 256 }
  0x32   : > { %p588_p0 = scmp.ne.s32.totalorder %s827_s25, %s587_s10  ;;  %p589_p3 = pneg %p829_p11 }
  0x33   : > { %p593_p10 = scmp.lt.u32.totalorder %s827_s25, %s939_s0  ;;  %p594_p1 = scmp.lt.u32.totalorder %s592_s13, %s587_s10 }
  0x34   : > { %p590_p5 = pnand %p589_p3, %p588_p0  ;;  %p596_p4 = scmp.lt.u32.totalorder %s587_s10, %s827_s25 }
  0x35   : > { %p595_p2 = por %p594_p1, %p593_p10 }
  0x36   : > { %p591_p7 = pneg %p590_p5 }
  0x37   : > { %p597_p6 = por %p596_p4, %p595_p2 }
  0x39   : > { %p598_p9 = pnand %p597_p6, %p591_p7 }
  0x3b   : > { %601 = shalt.err (!%p598_p9)
}
  0x3c   : > { %s602_s27 = scalar_lea.vmem %s833_s30, 128  ;;  %s690_s5 = smov [#allocation2]  }
  0x3d   : > { %p603_p12 = scmp.ne.s32.totalorder %s833_s30, %s602_s27  ;;  %s607_s6 = sshll.u32 %s690_s5, 4  ;;  %s608_s6 = int_to_ptr.vmem [resolvable:$false] %s607_s6 }
  0x3e   : > { %s609_s7 = scalar_lea.vmem %s608_s6, 256  ;;  %p610_p5 = scmp.lt.s32.totalorder %s833_s30, %s608_s6 }
  0x3f   : > { %p605_p13 = pnand %p603_p12, %p589_p3  ;;  %p611_p10 = scmp.lt.s32.totalorder %s609_s7, %s602_s27 }
  0x41   : > { %p606_p0 = pneg %p605_p13  ;;  %p612_p1 = por %p611_p10, %p610_p5 }
  0x43   : > { %p613_p2 = pnand %p612_p1, %p606_p0 }
  0x45   : > { %616 = shalt.err (!%p613_p2)
}
  0x46   : > { %500 = dma.hbm_to_vmem [thread:$0]  (!%p829_p11), %s827_s25, 128, %s833_s30, %s172_s9  }
  0x47   : > { %p958_p7 = scmp.ne.s32.totalorder %s949_s23, 0 }
  0x48   : > { %s863_s29 = sand.u32 (!%p958_p7), 1, %s679_s16   ;;  %p959_p3 = scmp.ne.s32.totalorder (!%p958_p7), %s947_s21, 0 }
  0x49   : > { %191 = sbr.rel (%p958_p7) target bundleno = 621 (0x26d), region = 36  ;;  %s467_s10 = sshll.u32 (!%p958_p7), %s863_s29, 3 }
  0x4a   : > { %s194_s11 = scalar_lea.sflag (!%p958_p7), [#allocation3], %s863_s29  ;;  %s197_s12 = scalar_lea.vmem (!%p958_p7), [#allocation2], %s467_s10 }
  0x50   : > { %662 = dma.done.wait (%p959_p3), %s194_s11, 128  }
  0x51   : > { %664 = vsyncadd (%p959_p3), %s194_s11, 4294967168  ;;  %p960_p11 = scmp.eq.s32.totalorder %s743_s19, 0 }
  0x53   : > { %666 = dma.done.wait (%p960_p11), [#allocation6], 64   ;;  %p961_p4 = pmov %p960_p11 }
  0x54   : > { %v691_v0 = vmov 0.0   ;;  %vm692_vm0 = vmmov 0   ;;  %v239_v1 = vld [vmem:[#allocation5] sm:$0x7]  ;;  %v226_v2 = vld [vmem:[%s197_s12] sm:$0xff]  ;;  %v693_v4 = vmov 1  }
  0x55   : > { %668 = vsyncadd (%p961_p4), [#allocation6], 4294967232  ;;  %480 = vmatprep.subr.mxu0 %v691_v0  ;;  %482 = vmatprep.mubr.msk.f32.mxu0 %vm692_vm0, %v691_v0  ;;  %v227_v3 = vmul.f32 %v226_v2, %v226_v2  ;;  %v694_v5 = vmov 0   ;;  %v470_v6 = vld [vmem:[%s941_s2] ss:$0 sm:$0xff]  ;;  %v695_v16 = vmov 2  }
  0x56   : > { %481 = vmatpush3.xpose.msra.mxu0 %v239_v1  ;;  %548 = vset.pattern.permute.xlu1 %v693_v4  ;;  %v472_v18 = vld [vmem:[%s942_s3 + $0x1] ss:$0 sm:$0xff]  ;;  %v471_v19 = vld [vmem:[%s942_s3] ss:$0 sm:$0xff]  ;;  %v473_v24 = vld [vmem:[%s942_s3 + $0x2] ss:$0 sm:$0xff] }
  0x57   : > { %228 = vadd.xlane.f32.xlu0 %v227_v3  ;;  %s475_s28 = sshll.u32 %s743_s19, 7  ;;  %s225_s27 = scalar_lea.vmem [#allocation7], %s467_s10 }
  0x58   : > { %547 = vset.pattern.permute.xlu0 %v694_v5  ;;  %s380_s5 = sshll.u32 %s225_s27, 4  ;;  %s895_s11 = scalar_lea.hbm %s943_s4, %s475_s28  ;;  %s897_s5 = int_to_ptr.vmem [resolvable:$true] %s380_s5 }
  0x59   : > { %483 = vmatmul.mubr.f32.vlgmr.msra.gmra.mrb[0].mxu0 %v226_v2  ;;  %s367_s12 = scalar_lea.sflag [#allocation4], %s863_s29  ;;  %s617_s21 = scalar_lea.vmem %s897_s5, 128 }
  0x5a   : > { %p618_p6 = scmp.ne.s32.totalorder %s897_s5, %s617_s21  ;;  %s696_s19 = smov [#allocation7]  }
  0x5b   : > { %s621_s10 = sshll.u32 %s696_s19, 4  ;;  %s622_s10 = int_to_ptr.vmem [resolvable:$false] %s621_s10 }
  0x5c   : > { %p619_p9 = pnand %p618_p6, %p814_p8  ;;  %s623_s23 = scalar_lea.vmem %s622_s10, 256 }
  0x5d   : > { %p624_p13 = scmp.lt.s32.totalorder %s897_s5, %s622_s10  ;;  %p625_p0 = scmp.lt.s32.totalorder %s623_s23, %s617_s21 }
  0x5e   : > { %p620_p12 = pneg %p619_p9 }
  0x5f   : > { %p626_p5 = por %p625_p0, %p624_p13 }
  0x61   : > { %p627_p10 = pnand %p626_p5, %p620_p12 }
  0xe4   : > { %v229_v7 = vpop.xlane.xlu0 %228 }
  0xe5   : > { %v317_v8 = vmul.f32 %v470_v6, %v229_v7  ;;  %v237_v17 = vmax.f32 %v229_v7, 1e-24  ;;  %vm232_vm1 = vcmp.eq.f32.partialorder %v229_v7, inf  ;;  %v235_v37 = vand.u32 2147483648, %v229_v7 }
  0xe6   : > { %vm234_vm2 = vcmp.eq.f32.partialorder %v229_v7, 0.0 }
  0xe7   : > { %v318_v9 = vmax.f32 %v317_v8, 1e-16 }
  0xe9   : > { %551 = vrsqrt.f32 %v318_v9 }
  0xea   : > { %553 = vrsqrt.f32 %v237_v17 }
  0xeb   : > { %555 = vrsqrt.f32 %v229_v7 }
  0xf3   : > { %v552_v10 = vpop.eup %551 }
  0xf4   : > { %v554_v25 = vpop.eup %553 }
  0xf5   : > { %v356_v30 = vmul.f32 %v554_v25, %v226_v2  ;;  %v556_v35 = vpop.eup %555 }
  0xf6   : > { %v231_v36 = vmul.f32 %v556_v35, %v229_v7 }
  0xf8   : > { %v233_v38 = vsel %vm232_vm1, %v229_v7, %v231_v36 }
  0xf9   : > { %v236_v40 = vsel %vm234_vm2, %v235_v37, %v233_v38 }
 0x12c   : > { %v306_v11 = vpop.f32.mrb[0].mxu0 }
 0x12d   : > { %v320_v12 = vmul.f32 %v552_v10, %v306_v11  ;;  %v484_v13 = vpop.f32.mrb[1].mxu0 }
 0x12f   : > { %v321_v14 = vmax.f32 %v320_v12, 0.0 }
 0x131   : > { %v322_v15 = vadd.f32 1.0, %v321_v14 }
 0x133   : > { %336 = vperm.xlu1 %548, %v322_v15   ;;  %326 = vperm.xlu0 %547, %v322_v15  }
 0x137   : > { %549 = vset.pattern.permute.xlu1 %v695_v16  ;;  %550 = vset.pattern.permute.xlu0 %v695_v16 }
 0x138   : > { %347 = vperm.xlu1 %549, %v322_v15  }
 0x1b2   : > { %v337_v20 = vpop.permute.xlu1 %336  ;;  %v327_v21 = vpop.permute.xlu0 %326 }
 0x1b3   : > { %v343_v22 = vmul.f32 %v472_v18, %v337_v20  ;;  %v333_v23 = vmul.f32 %v471_v19, %v327_v21 }
 0x1b5   : > { %v344_v27 = vadd.f32 %v343_v22, %v333_v23 }
 0x1b7   : > { %v348_v26 = vpop.permute.xlu1 %347 }
 0x1b8   : > { %v354_v28 = vmul.f32 %v473_v24, %v348_v26 }
 0x1ba   : > { %v355_v29 = vadd.f32 %v354_v28, %v344_v27 }
 0x1bc   : > { %v357_v31 = vadd.f32 %v356_v30, %v355_v29 }
 0x1be   : > { %v358_v32 = vmul.f32 %v357_v31, %v357_v31 }
 0x1c0   : > { %359 = vadd.xlane.f32.xlu1 %v358_v32 }
 0x24d   : > { %v360_v33 = vpop.xlane.xlu1 %359 }
 0x24e   : > { %v361_v34 = vmax.f32 %v360_v33, 1e-24 }
 0x250   : > { %557 = vrsqrt.f32 %v361_v34 }
 0x25a   : > { %v558_v39 = vpop.eup %557 }
 0x25b   : > { %v363_v41 = vmul.f32 %v558_v39, %v236_v40 }
 0x25d   : > { %v364_v42 = vmul.f32 %v363_v41, %v357_v31 }
 0x25f   : > { %365 = vst [vmem:[%s225_s27] sm:$0xff] %v364_v42 }
 0x260   : > { %630 = shalt.err (!%p627_p10)
}
 0x261   : > { %s631_s29 = scalar_lea.hbm %s895_s11, 128  ;;  %s635_s8 = scalar_lea.hbm %s943_s4, 256 }
 0x262   : > { %p632_p1 = scmp.ne.s32.totalorder %s895_s11, %s631_s29  ;;  %p636_p3 = scmp.lt.u32.totalorder %s895_s11, %s943_s4 }
 0x263   : > { %p637_p11 = scmp.lt.u32.totalorder %s635_s8, %s631_s29  ;;  %p639_p6 = scmp.lt.u32.totalorder %s631_s29, %s895_s11 }
 0x264   : > { %p633_p2 = pnand %p632_p1, %p814_p8 }
 0x265   : > { %p638_p4 = por %p637_p11, %p636_p3 }
 0x266   : > { %p634_p7 = pneg %p633_p2 }
 0x267   : > { %p640_p9 = por %p639_p6, %p638_p4 }
 0x269   : > { %p641_p12 = pnand %p640_p9, %p634_p7 }
 0x26b   : > { %644 = shalt.err (!%p641_p12)
}
 0x26c   : > { %491 = dma.vmem_to_hbm [thread:$0]  (%p814_p8), %s897_s5, 128, %s895_s11, %s367_s12  }
 0x26d PF: > { %s392_s14 = sand.u32 1, %s675_s15   ;;  %p962_p13 = scmp.ne.s32.totalorder %s948_s22, 0 }
 0x26e   : > { %p963_p0 = scmp.ge.s32.totalorder %s687_s18, 2  ;;  %s393_s28 = scalar_lea.sflag [#allocation4], %s392_s14 }
 0x270   : > { %p502_p5 = pnand %p963_p0, %p962_p13 }
 0x272   : > { %670 = dma.done.wait (!%p502_p5), %s393_s28, 128  }
 0x273   : > { %672 = vsyncadd (!%p502_p5), %s393_s28, 4294967168  ;;  %p18_p10 = scmp.ge.s32.totalorder %s770_s26, 4   ;;  %s964_s15 = smov %s679_s16 }
 0x274   : > { %s965_s16 = smov %s683_s17  ;;  %s966_s17 = smov %s806_s20 }
 0x275   : > { %s967_s18 = smov %s770_s26  ;;  %20 = sbr.rel (!%p18_p10) target bundleno = 6 (0x6), region = 85 }
 0x27c   :  { %398 = vsyncpa [#allocation3], 1 }
 0x27d   :  { %400 = vsyncpa [#allocation3 + $0x1], 1 }
 0x27e   :  { %401 = vsyncpa [#allocation6], 1 }
 0x27f   :  { %402 = vsyncpa [#allocation4], 1 }
 0x280   :  { %404 = vsyncpa [#allocation4 + $0x1], 1 }

</bundles_post_ra>
